<compile_context>
chip_gen: v7x
topology: tpu7x:2x2x1
jax: 0.10.0
libtpu: 0.0.40
codegen_flags: <defaults>
</compile_context>

<pallas_src>
import functools
import math

import jax
import jax.numpy as jnp
from jax.experimental import pallas as pl
from jax.experimental.pallas import tpu as pltpu


# --------------------------------------------------------------------------
# Kernel
# --------------------------------------------------------------------------
def _eq_linear_kernel(x_ref, wt_ref, b_ref, o_ref, acc_ref, *,
                      weight_scale, bias_scale, negative_slope):
    """Computes one (bm, bn) output tile, accumulating over the K grid axis.

    x_ref : [bm, bk]   activation tile
    wt_ref: [bk, bn]   RAW (unscaled) weight tile, already transposed to [K, N]
    b_ref : [1,  bn]   raw bias tile
    o_ref : [bm, bn]   output tile
    acc_ref: [bm, bn]  f32 accumulator (VMEM scratch, persists across K steps)
    """
    k = pl.program_id(2)

    @pl.when(k == 0)
    def _():
        acc_ref[...] = jnp.zeros_like(acc_ref)

    acc_ref[...] += jnp.dot(x_ref[...], wt_ref[...],
                            preferred_element_type=jnp.float32)

    @pl.when(k == pl.num_programs(2) - 1)
    def _():
        # Equalized-LR scalar scale applied to the accumulator (cheaper than
        # materializing W * scale in HBM), then bias + LeakyReLU epilogue.
        y = acc_ref[...] * weight_scale + b_ref[...] * bias_scale
        o_ref[...] = jnp.where(y >= 0.0, y, negative_slope * y).astype(o_ref.dtype)


# --------------------------------------------------------------------------
# Wrapper
# --------------------------------------------------------------------------
def _round_up(x, m):
    return ((x + m - 1) // m) * m


def equalized_linear(x, weight, bias=None, *, lr_multiplier=1.0,
                     negative_slope=0.01):
    """EqualizedLinear.forward: LeakyReLU(x @ (W*ws)^T + b*bs).

    x:      [..., in_dim]
    weight: [out_dim, in_dim]   (torch layout, raw / unscaled)
    bias:   [out_dim] or None
    """
    # TODO(synk): only the default act_fn='LeakyReLU' is implemented; other
    # nn.<act_fn> choices would need their own fused epilogue.
    orig_dtype = x.dtype
    *lead, in_dim = x.shape
    out_dim, in_dim_w = weight.shape
    assert in_dim == in_dim_w, (in_dim, in_dim_w)

    weight_scale = float(lr_multiplier) / math.sqrt(in_dim)
    bias_scale = float(lr_multiplier) if bias is not None else 0.0
    if bias is None:
        bias = jnp.zeros((out_dim,), jnp.float32)

    x2 = x.reshape(-1, in_dim).astype(jnp.float32)
    M, K, N = x2.shape[0], in_dim, out_dim

    # Tile sizes: sublane axis multiples of 8, lane axes multiples of 128.
    bm = min(_round_up(M, 8), 256)
    bn = min(_round_up(N, 128), 256)
    bk = min(_round_up(K, 128), 512)
    Mp, Kp, Np = _round_up(M, bm), _round_up(K, bk), _round_up(N, bn)

    # Zero padding: padded K columns contribute nothing to the contraction and
    # padded M rows / N columns are sliced off below.
    xp = jnp.pad(x2, ((0, Mp - M), (0, Kp - K)))
    wt = jnp.pad(weight.astype(jnp.float32).T, ((0, Kp - K), (0, Np - N)))
    bp = jnp.pad(bias.astype(jnp.float32), (0, Np - N)).reshape(1, Np)

    grid = (Mp // bm, Np // bn, Kp // bk)
    kernel = functools.partial(_eq_linear_kernel,
                               weight_scale=weight_scale,
                               bias_scale=bias_scale,
                               negative_slope=negative_slope)

    out = pl.pallas_call(
        kernel,
        grid_spec=pltpu.PrefetchScalarGridSpec(
            num_scalar_prefetch=0,
            grid=grid,
            in_specs=[
                pl.BlockSpec((bm, bk), lambda i, j, k: (i, k)),
                pl.BlockSpec((bk, bn), lambda i, j, k: (k, j)),
                pl.BlockSpec((1, bn), lambda i, j, k: (0, j)),
            ],
            out_specs=pl.BlockSpec((bm, bn), lambda i, j, k: (i, j)),
            scratch_shapes=[pltpu.VMEM((bm, bn), jnp.float32)],
        ),
        out_shape=jax.ShapeDtypeStruct((Mp, Np), jnp.float32),
        compiler_params=pltpu.CompilerParams(
            dimension_semantics=("parallel", "parallel", "arbitrary")),
    )(xp, wt, bp)

    out = out[:M, :N].astype(orig_dtype)
    return out.reshape(*lead, N)


# --------------------------------------------------------------------------
# Pure-JAX reference of the module's forward (for correctness checking)
# --------------------------------------------------------------------------
def _reference(x, weight, bias, lr_multiplier=1.0, negative_slope=0.01):
    ws = lr_multiplier / math.sqrt(weight.shape[1])
    y = x @ (weight * ws).T
    if bias is not None:
        y = y + bias * lr_multiplier
    return jnp.where(y >= 0.0, y, negative_slope * y)


# --------------------------------------------------------------------------
if __name__ == "__main__":
    key = jax.random.PRNGKey(0)
    k1, k2, k3, k4 = jax.random.split(key, 4)

    # Case 1: tiny style-affine sized layer (batch=2, in_dim=32 -> out_dim=16).
    IN1, OUT1 = 32, 16
    x1 = jax.random.normal(k1, (2, IN1), jnp.float32)
    w1 = jax.random.normal(k2, (OUT1, IN1), jnp.float32)   # torch.randn init
    b1 = jnp.full((OUT1,), 1.0, jnp.float32)                # bias_init=1
    out1 = equalized_linear(x1, w1, b1)
    jax.block_until_ready(out1)
    ref1 = _reference(x1, w1, b1)
    assert out1.shape == (2, OUT1), out1.shape
    assert jnp.allclose(out1, ref1, atol=1e-5, rtol=1e-5)

    # Case 2: leading batch dims flattened into M, non-aligned K/N padding path.
    IN2, OUT2 = 160, 200
    x2 = jax.random.normal(k3, (2, 8, IN2), jnp.float32)
    w2 = jax.random.normal(k4, (OUT2, IN2), jnp.float32)
    b2 = jnp.zeros((OUT2,), jnp.float32)                    # bias_init=0 (default)
    out2 = equalized_linear(x2, w2, b2)
    jax.block_until_ready(out2)
    ref2 = _reference(x2, w2, b2)
    assert out2.shape == (2, 8, OUT2), out2.shape
    assert jnp.allclose(out2, ref2, atol=1e-4, rtol=1e-4)

    assert jnp.all(jnp.isfinite(out1)) and jnp.all(jnp.isfinite(out2))
    print("KERNEL_OK")
</pallas_src>

<mosaic_0001>
module attributes {stable_mosaic.version = 11 : i64} {
  func.func @_eq_linear_kernel(%arg0: i32, %arg1: i32, %arg2: i32, %arg3: memref<8x128xf32, #tpu.memory_space<vmem>>, %arg4: memref<128x128xf32, #tpu.memory_space<vmem>>, %arg5: memref<1x128xf32, #tpu.memory_space<vmem>>, %arg6: memref<8x128xf32, #tpu.memory_space<vmem>>, %arg7: memref<8x128xf32, #tpu.memory_space<vmem>>) attributes {dimension_semantics = [#tpu.dimension_semantics<parallel>, #tpu.dimension_semantics<parallel>, #tpu.dimension_semantics<arbitrary>], iteration_bounds = array<i64: 1, 1, 1>, scalar_prefetch = 0 : i64, scratch_operands = 1 : i64, tpu.core_type = #tpu.core_type<tc>, window_params = [{transform_indices = @transform_0, window_bounds = array<i64: 8, 128>}, {transform_indices = @transform_1, window_bounds = array<i64: 128, 128>}, {transform_indices = @transform_2, window_bounds = array<i64: 1, 128>}, {transform_indices = @transform_3, window_bounds = array<i64: 8, 128>}]} {
    %c0_i32 = arith.constant 0 : i32
    %0 = arith.cmpi eq, %arg2, %c0_i32 : i32
    %1 = arith.extui %0 : i1 to i32
    %c0_i32_0 = arith.constant 0 : i32
    %2 = arith.cmpi ne, %1, %c0_i32_0 : i32
    scf.if %2 {
      %cst_10 = arith.constant 0.000000e+00 : f32
      %12 = vector.broadcast %cst_10 : f32 to vector<8x128xf32>
      %c0_11 = arith.constant 0 : index
      %c0_12 = arith.constant 0 : index
      %13 = vector.load %arg7[%c0_11, %c0_12] : memref<8x128xf32, #tpu.memory_space<vmem>>, vector<8x128xf32>
      tpu.vector_store %arg7[%c0_11, %c0_12], %12 {strides = array<i32>} : memref<8x128xf32, #tpu.memory_space<vmem>>, vector<8x128xf32>,
    } else {
    }
    %c0 = arith.constant 0 : index
    %c0_1 = arith.constant 0 : index
    %3 = vector.load %arg7[%c0, %c0_1] : memref<8x128xf32, #tpu.memory_space<vmem>>, vector<8x128xf32>
    %c0_2 = arith.constant 0 : index
    %c0_3 = arith.constant 0 : index
    %4 = vector.load %arg3[%c0_2, %c0_3] : memref<8x128xf32, #tpu.memory_space<vmem>>, vector<8x128xf32>
    %c0_4 = arith.constant 0 : index
    %c0_5 = arith.constant 0 : index
    %5 = vector.load %arg4[%c0_4, %c0_5] : memref<128x128xf32, #tpu.memory_space<vmem>>, vector<128x128xf32>
    %cst = arith.constant dense<0.000000e+00> : vector<8x128xf32>
    %6 = tpu.matmul %4, %5, %cst {dimension_numbers = #tpu.dot_dimension_numbers<[1], [0], [0], [1], [0, 0, 1, 1], [], []>} : vector<8x128xf32>, vector<128x128xf32>, vector<8x128xf32> -> vector<8x128xf32>
    %7 = arith.addf %3, %6 : vector<8x128xf32>
    %c0_6 = arith.constant 0 : index
    %c0_7 = arith.constant 0 : index
    %8 = vector.load %arg7[%c0_6, %c0_7] : memref<8x128xf32, #tpu.memory_space<vmem>>, vector<8x128xf32>
    tpu.vector_store %arg7[%c0_6, %c0_7], %7 {strides = array<i32>} : memref<8x128xf32, #tpu.memory_space<vmem>>, vector<8x128xf32>,
    %c0_i32_8 = arith.constant 0 : i32
    %9 = arith.cmpi eq, %arg2, %c0_i32_8 : i32
    %10 = arith.extui %9 : i1 to i32
    %c0_i32_9 = arith.constant 0 : i32
    %11 = arith.cmpi ne, %10, %c0_i32_9 : i32
    scf.if %11 {
      %c0_10 = arith.constant 0 : index
      %c0_11 = arith.constant 0 : index
      %12 = vector.load %arg7[%c0_10, %c0_11] : memref<8x128xf32, #tpu.memory_space<vmem>>, vector<8x128xf32>
      %cst_12 = arith.constant 0.176776692 : f32
      %13 = vector.broadcast %cst_12 : f32 to vector<8x128xf32>
      %14 = arith.mulf %12, %13 : vector<8x128xf32>
      %c0_13 = arith.constant 0 : index
      %c0_14 = arith.constant 0 : index
      %15 = vector.load %arg5[%c0_13, %c0_14] : memref<1x128xf32, #tpu.memory_space<vmem>>, vector<1x128xf32>
      %cst_15 = arith.constant 1.000000e+00 : f32
      %16 = vector.broadcast %cst_15 : f32 to vector<1x128xf32>
      %17 = arith.mulf %15, %16 : vector<1x128xf32>
      %18 = vector.broadcast %17 : vector<1x128xf32> to vector<8x128xf32>
      %19 = arith.addf %14, %18 : vector<8x128xf32>
      %cst_16 = arith.constant 0.000000e+00 : f32
      %20 = vector.broadcast %cst_16 : f32 to vector<8x128xf32>
      %21 = arith.cmpf oge, %19, %20 : vector<8x128xf32>
      %cst_17 = arith.constant 0.00999999977 : f32
      %22 = vector.broadcast %cst_17 : f32 to vector<8x128xf32>
      %23 = arith.mulf %22, %19 : vector<8x128xf32>
      %24 = arith.select %21, %19, %23 : vector<8x128xi1>, vector<8x128xf32>
      %c0_18 = arith.constant 0 : index
      %c0_19 = arith.constant 0 : index
      %25 = vector.load %arg6[%c0_18, %c0_19] : memref<8x128xf32, #tpu.memory_space<vmem>>, vector<8x128xf32>
      tpu.vector_store %arg6[%c0_18, %c0_19], %24 {strides = array<i32>} : memref<8x128xf32, #tpu.memory_space<vmem>>, vector<8x128xf32>,
    } else {
    }
    return
  }
  func.func @transform_0(%arg0: i32, %arg1: i32, %arg2: i32) -> (i32, i32) {
    %c0_i32 = arith.constant 0 : i32
    return %arg0, %arg2 : i32, i32
  }
  func.func @transform_1(%arg0: i32, %arg1: i32, %arg2: i32) -> (i32, i32) {
    %c0_i32 = arith.constant 0 : i32
    return %arg2, %arg1 : i32, i32
  }
  func.func @transform_2(%arg0: i32, %arg1: i32, %arg2: i32) -> (i32, i32) {
    %c0_i32 = arith.constant 0 : i32
    %c0_i32_0 = arith.constant 0 : i32
    return %c0_i32, %arg1 : i32, i32
  }
  func.func @transform_3(%arg0: i32, %arg1: i32, %arg2: i32) -> (i32, i32) {
    %c0_i32 = arith.constant 0 : i32
    return %arg0, %arg1 : i32, i32
  }
}

</mosaic_0001>

<bundles_post_ra>
// kernel: tpu_custom_call.1
= control target key start
LH: loop header
LB: loop body
LE: loop exit
PB: predicated region body
PF: predicated region fallthrough
CT: control target
= control target key end

     0   :  { %8 = vsyncpa [#allocation4], 0  ;;  %s400_s0 = inlined_call_operand.hbm [shape: f32[8,128], index: 0, kind: input, shape index: {}]   ;;  %s401_s1 = inlined_call_operand.hbm [shape: f32[128,128], index: 1, kind: input, shape index: {}]   ;;  %s402_s2 = inlined_call_operand.vmem [shape: f32[1,128], index: 2, kind: input, shape index: {}]   ;;  %s403_s3 = inlined_call_operand.hbm [shape: f32[8,128], index: 3, kind: output, shape index: {}]  }
   0x1   :  { %9 = vsyncpa [#allocation7], 0 }
   0x2   :  { %10 = vsyncpa [#allocation5], 0  ;;  %s326_s12 = smov [#allocation3]   ;;  %s327_s14 = smov [#allocation6]  }
   0x3   :  { %s17_s13 = sshll.u32 %s326_s12, 4  ;;  %s26_s15 = sshll.u32 %s327_s14, 4  ;;  %s18_s13 = int_to_ptr.vmem [resolvable:$true] %s17_s13  ;;  %s354_s15 = int_to_ptr.vmem [resolvable:$true] %s26_s15 }
   0x4   :  { %s254_s18 = scalar_lea.hbm %s400_s0, 128 }
   0x5   :  { %p255_p0 = scmp.ne.s32.totalorder %s400_s0, %s254_s18  ;;  %p258_p1 = scmp.lt.u32.totalorder %s254_s18, %s400_s0 }
   0x7   :  { %p260_p2 = pnand %p258_p1, %p255_p0 }
   0x9   :  { %263 = shalt.err (!%p260_p2)
}
   0xa   :  { %s264_s23 = scalar_lea.vmem %s18_s13, 128  ;;  %p269_p4 = scmp.lt.s32.totalorder %s18_s13, %s18_s13 }
   0xb   :  { %p265_p3 = scmp.ne.s32.totalorder %s18_s13, %s264_s23  ;;  %p270_p5 = scmp.lt.s32.totalorder %s264_s23, %s264_s23 }
   0xd   :  { %p271_p6 = por %p270_p5, %p269_p4 }
   0xf   :  { %p272_p7 = pnand %p271_p6, %p265_p3 }
  0x11   :  { %275 = shalt.err (!%p272_p7)
}
  0x12   :  { %20 = dma.hbm_to_vmem [thread:$0]  %s400_s0, 128, %s18_s13, [#allocation4]  }
  0x13   :  { %s276_s28 = scalar_lea.hbm %s401_s1, 2048 }
  0x14   :  { %p277_p8 = scmp.ne.s32.totalorder %s401_s1, %s276_s28  ;;  %p280_p9 = scmp.lt.u32.totalorder %s276_s28, %s401_s1 }
  0x16   :  { %p282_p10 = pnand %p280_p9, %p277_p8 }
  0x18   :  { %285 = shalt.err (!%p282_p10)
}
  0x19   :  { %s286_s6 = scalar_lea.vmem %s354_s15, 2048  ;;  %p291_p12 = scmp.lt.s32.totalorder %s354_s15, %s354_s15 }
  0x1a   :  { %p287_p11 = scmp.ne.s32.totalorder %s354_s15, %s286_s6  ;;  %p292_p13 = scmp.lt.s32.totalorder %s286_s6, %s286_s6 }
  0x1c   :  { %p293_p0 = por %p292_p13, %p291_p12 }
  0x1e   :  { %p294_p1 = pnand %p293_p0, %p287_p11 }
  0x20   :  { %297 = shalt.err (!%p294_p1)
}
  0x21   :  { %s328_s0 = smov 128   ;;  %s329_s7 = smov 8  }
  0x22   :  { %32 = dma.hbm_to_vmem [thread:$0]  %s401_s1, 2048, %s354_s15, [#allocation7], %s328_s0, %s328_s0, %s329_s7  }
  0x23   :  { %320 = dma.done.wait [#allocation4], 128  }
  0x24   :  { %321 = vsyncadd [#allocation4], 4294967168 }
  0x25   :  { %322 = dma.done.wait [#allocation7], 2048  }
  0x26   :  { %323 = vsyncadd [#allocation7], 4294965248  ;;  %v330_v0 = vmov 0.0|0.0   ;;  %vm331_vm0 = vmmov 0   ;;  %v332_v1 = vmov 0.0   ;;  %v48_v2 = vld [vmem:[#allocation6] sm:$0xff] }
  0x27   :  { %222 = vmatprep.subr.bf16.mxu0 %v330_v0  ;;  %219 = vmatprep.mubr.msk.f32.mxu0 %vm331_vm0, %v332_v1  ;;  %v49_v3 = vld [vmem:[#allocation6 + $0x8] sm:$0xff]  ;;  %v50_v4 = vld [vmem:[#allocation6 + $0x10] sm:$0xff]  ;;  %v51_v6 = vld [vmem:[#allocation6 + $0x18] sm:$0xff]  ;;  %s333_s11 = smov [#allocation8]  }
  0x28   :  { %v223_v5 = vpack.c.bf16 %v49_v3, %v48_v2  ;;  %v226_v7 = vpack.c.bf16 %v51_v6, %v50_v4  ;;  %v52_v8 = vld [vmem:[#allocation6 + $0x20] sm:$0xff]  ;;  %v53_v9 = vld [vmem:[#allocation6 + $0x28] sm:$0xff]  ;;  %v54_v11 = vld [vmem:[#allocation6 + $0x30] sm:$0xff]  ;;  %s159_s12 = sshll.u32 %s333_s11, 4  ;;  %s160_s12 = int_to_ptr.vmem [resolvable:$true] %s159_s12 }
  0x29   :  { %v229_v10 = vpack.c.bf16 %v53_v9, %v52_v8  ;;  %v55_v12 = vld [vmem:[#allocation6 + $0x38] sm:$0xff]  ;;  %v56_v14 = vld [vmem:[#allocation6 + $0x40] sm:$0xff]  ;;  %v57_v15 = vld [vmem:[#allocation6 + $0x48] sm:$0xff]  ;;  %s298_s13 = scalar_lea.vmem %s160_s12, 128  ;;  %p303_p3 = scmp.lt.s32.totalorder %s160_s12, %s160_s12 }
  0x2a   :  { %224 = vmatpush3.bf16.msra.mxu0 %v223_v5  ;;  %v232_v13 = vpack.c.bf16 %v55_v12, %v54_v11  ;;  %v235_v16 = vpack.c.bf16 %v57_v15, %v56_v14  ;;  %v58_v17 = vld [vmem:[#allocation6 + $0x50] sm:$0xff]  ;;  %v59_v18 = vld [vmem:[#allocation6 + $0x58] sm:$0xff]  ;;  %v60_v20 = vld [vmem:[#allocation6 + $0x60] sm:$0xff]  ;;  %p299_p2 = scmp.ne.s32.totalorder %s160_s12, %s298_s13  ;;  %p304_p4 = scmp.lt.s32.totalorder %s298_s13, %s298_s13 }
  0x2b   :  { %225 = vmatprep.subr.bf16.mxu0 %v330_v0  ;;  %v238_v19 = vpack.c.bf16 %v59_v18, %v58_v17  ;;  %v61_v21 = vld [vmem:[#allocation6 + $0x68] sm:$0xff]  ;;  %v62_v23 = vld [vmem:[#allocation6 + $0x70] sm:$0xff]  ;;  %v63_v24 = vld [vmem:[#allocation6 + $0x78] sm:$0xff] }
  0x2c   :  { %v241_v22 = vpack.c.bf16 %v61_v21, %v60_v20  ;;  %v244_v25 = vpack.c.bf16 %v63_v24, %v62_v23  ;;  %v47_v26 = vld [vmem:[#allocation3] sm:$0xff]  ;;  %p305_p5 = por %p304_p4, %p303_p3 }
  0x2d   :  { %v169_v28 = vld [vmem:[%s402_s2] ss:$0 sm:$0xff] }
  0x2e   :  { %227 = vmatpush3.bf16.msra.mxu0 %v226_v7  ;;  %p306_p6 = pnand %p305_p5, %p299_p2 }
  0x2f   :  { %228 = vmatprep.subr.bf16.mxu0 %v330_v0 }
  0x32   :  { %230 = vmatpush3.bf16.msra.mxu0 %v229_v10 }
  0x33   :  { %231 = vmatprep.subr.bf16.mxu0 %v330_v0 }
  0x36   :  { %233 = vmatpush3.bf16.msra.mxu0 %v232_v13 }
  0x37   :  { %234 = vmatprep.subr.bf16.mxu0 %v330_v0 }
  0x3a   :  { %236 = vmatpush3.bf16.msra.mxu0 %v235_v16 }
  0x3b   :  { %237 = vmatprep.subr.bf16.mxu0 %v330_v0 }
  0x3e   :  { %239 = vmatpush3.bf16.msra.mxu0 %v238_v19 }
  0x3f   :  { %240 = vmatprep.subr.bf16.mxu0 %v330_v0 }
  0x42   :  { %242 = vmatpush3.bf16.msra.mxu0 %v241_v22 }
  0x43   :  { %243 = vmatprep.subr.bf16.mxu0 %v330_v0 }
  0x46   :  { %245 = vmatpush3.bf16.msra.mxu0 %v244_v25 }
  0x49   :  { %220 = vmatmul.mubr.f32.vlgmr.msra.gmra.mrb[0].mxu0 %v47_v26 }
 0x11c   :  { %v130_v27 = vpop.f32.mrb[0].mxu0 }
 0x11d   :  { %v140_v29 = vmul.f32 0.17677669, %v130_v27  ;;  %v221_v30 = vpop.f32.mrb[1].mxu0 }
 0x11f   :  { %v148_v31 = vadd.f32 %v169_v28, %v140_v29 }
 0x121   :  { %v150_v32 = vmul.f32 0.01, %v148_v31  ;;  %vm149_vm1 = vcmp.ge.f32.partialorder %v148_v31, 0.0 }
 0x123   :  { %v151_v33 = vsel %vm149_vm1, %v148_v31, %v150_v32 }
 0x124   :  { %152 = vst [vmem:[#allocation8] sm:$0xff] %v151_v33 }
 0x125   :  { %309 = shalt.err (!%p306_p6)
}
 0x126   :  { %s310_s2 = scalar_lea.hbm %s403_s3, 128 }
 0x127   :  { %p311_p7 = scmp.ne.s32.totalorder %s403_s3, %s310_s2  ;;  %p314_p8 = scmp.lt.u32.totalorder %s310_s2, %s403_s3 }
 0x129   :  { %p316_p9 = pnand %p314_p8, %p311_p7 }
 0x12b   :  { %319 = shalt.err (!%p316_p9)
}
 0x12c   :  { %162 = dma.vmem_to_hbm [thread:$0]  %s160_s12, 128, %s403_s3, [#allocation5]  }
 0x12d   :  { %324 = dma.done.wait [#allocation5], 128  }
 0x12e   :  { %325 = vsyncadd [#allocation5], 4294967168 }
 0x12f   :  { %166 = vsyncpa [#allocation4], 1 }
 0x130   :  { %167 = vsyncpa [#allocation7], 1 }
 0x131   :  { %168 = vsyncpa [#allocation5], 1 }

</bundles_post_ra>
